<compile_context>
chip_gen: v7x
topology: tpu7x:2x2x1
jax: 0.10.0
libtpu: 0.0.40
codegen_flags: <defaults>
</compile_context>

<pallas_src>
import functools
import math

import jax
import jax.numpy as jnp
from jax.experimental import pallas as pl
from jax.experimental.pallas import tpu as pltpu


# ----------------------------- Pallas kernel --------------------------------

def _add_pe_kernel(x_ref, pe_ref, o_ref, *, batch):
    # x_ref: (TS, B*E)   pe_ref: (TS, E)   o_ref: (TS, B*E)
    pe = pe_ref[...]
    if batch > 1:
        # lane-wise repeat so column b*E + e picks pe[:, e]; matches the row-major
        # (S, B, E) -> (S, B*E) flattening of x.
        pe = jnp.concatenate([pe] * batch, axis=-1)
    o_ref[...] = x_ref[...] + pe.astype(o_ref.dtype)


# ----------------------------- wrapper ---------------------------------------

def _round_up(n, m):
    return (n + m - 1) // m * m


def _tile_rows(n_rows, row_bytes, target_bytes=2 << 20):
    """Sublane-aligned row tile: large enough to amortize per-step overhead, small
    enough to double-buffer comfortably in VMEM, and >= 2 grid steps when possible
    (v7x megacore)."""
    cap = max(8, (target_bytes // max(row_bytes, 1)) // 8 * 8)
    ts = min(_round_up(n_rows, 8), cap)
    if n_rows > 8 and pl.cdiv(n_rows, ts) < 2:
        ts = max(8, _round_up(pl.cdiv(n_rows, 2), 8))
    return ts


def sinusoidal_pe(n_embd, max_len=512, dtype=jnp.float32):
    """Exactly the buffer built in PositionalEncoding.__init__, stored as (max_len, E)."""
    assert n_embd % 2 == 0, "n_embd must be even (as the PyTorch module requires)"
    position = jnp.arange(max_len, dtype=jnp.float32)[:, None]                 # (L, 1)
    div_term = jnp.exp(jnp.arange(0, n_embd, 2, dtype=jnp.float32)
                       * (-math.log(10000.0) / n_embd))                        # (E/2,)
    ang = position * div_term                                                  # (L, E/2)
    pe = jnp.zeros((max_len, n_embd), jnp.float32)
    pe = pe.at[:, 0::2].set(jnp.sin(ang))
    pe = pe.at[:, 1::2].set(jnp.cos(ang))
    return pe.astype(dtype)


def positional_encoding(x, pe, dropout_p=0.0):
    """x: (S, B, E) seq-first, pe: (max_len, E).  Returns x + pe[:S] (dropout in eval)."""
    S, B, E = x.shape
    assert S <= pe.shape[0] and E == pe.shape[1]
    row = B * E

    x2 = x.reshape(S, row)                              # contiguous view, no HBM copy
    pe = pe if pe.dtype == x.dtype else pe.astype(x.dtype)

    ts = _tile_rows(S, row * x.dtype.itemsize)
    grid = (pl.cdiv(S, ts),)

    out2 = pl.pallas_call(
        functools.partial(_add_pe_kernel, batch=B),
        out_shape=jax.ShapeDtypeStruct((S, row), x.dtype),
        grid=grid,
        in_specs=[
            pl.BlockSpec((ts, row), lambda i: (i, 0)),  # x tile, lane-dense last dim
            pl.BlockSpec((ts, E), lambda i: (i, 0)),    # pe tile, read once per seq-tile
        ],
        out_specs=pl.BlockSpec((ts, row), lambda i: (i, 0)),
        compiler_params=pltpu.CompilerParams(dimension_semantics=("parallel",)),
    )(x2, pe)

    # Dropout is identity in eval mode (and for p = 0.0).
    # TODO(synk): training-mode dropout (Bernoulli mask + 1/(1-p) scale via pltpu PRNG) not wired.
    del dropout_p
    return out2.reshape(S, B, E)


# ----------------------------- main ------------------------------------------

if __name__ == "__main__":
    S, B, E = 64, 4, 128       # (seq, batch, n_embd), seq-first like the PyTorch module
    DROPOUT = 0.0

    key = jax.random.PRNGKey(0)
    x = jax.random.normal(key, (S, B, E), jnp.float32)
    pe = sinusoidal_pe(E, max_len=512)

    fwd = jax.jit(lambda x: positional_encoding(x, pe, DROPOUT))
    out = jax.block_until_ready(fwd(x))

    # pure-JAX reference: x + pe[:S] broadcast over batch (dropout identity in eval)
    ref = x + pe[:S][:, None, :]
    assert out.shape == (S, B, E)
    assert jnp.allclose(out, ref, atol=1e-6, rtol=1e-6), (
        f"max abs diff {jnp.max(jnp.abs(out - ref))}")

    print("KERNEL_OK")
</pallas_src>

<mosaic_0001>
module attributes {stable_mosaic.version = 11 : i64} {
  func.func @_add_pe_kernel(%arg0: i32, %arg1: memref<32x512xf32, #tpu.memory_space<vmem>>, %arg2: memref<32x128xf32, #tpu.memory_space<vmem>>, %arg3: memref<32x512xf32, #tpu.memory_space<vmem>>) attributes {dimension_semantics = [#tpu.dimension_semantics<parallel>], iteration_bounds = array<i64: 2>, scalar_prefetch = 0 : i64, scratch_operands = 0 : i64, tpu.core_type = #tpu.core_type<tc>, window_params = [{transform_indices = @transform_0, window_bounds = array<i64: 32, 512>}, {transform_indices = @transform_1, window_bounds = array<i64: 32, 128>}, {transform_indices = @transform_2, window_bounds = array<i64: 32, 512>}]} {
    %c0 = arith.constant 0 : index
    %c0_0 = arith.constant 0 : index
    %0 = vector.load %arg2[%c0, %c0_0] : memref<32x128xf32, #tpu.memory_space<vmem>>, vector<32x128xf32>
    %1 = tpu.concatenate %0, %0, %0, %0 in 1 : vector<32x128xf32>, vector<32x128xf32>, vector<32x128xf32>, vector<32x128xf32> -> vector<32x512xf32>
    %c0_1 = arith.constant 0 : index
    %c0_2 = arith.constant 0 : index
    %2 = vector.load %arg1[%c0_1, %c0_2] : memref<32x512xf32, #tpu.memory_space<vmem>>, vector<32x512xf32>
    %3 = arith.addf %2, %1 : vector<32x512xf32>
    %c0_3 = arith.constant 0 : index
    %c0_4 = arith.constant 0 : index
    %4 = vector.load %arg3[%c0_3, %c0_4] : memref<32x512xf32, #tpu.memory_space<vmem>>, vector<32x512xf32>
    tpu.vector_store %arg3[%c0_3, %c0_4], %3 {strides = array<i32>} : memref<32x512xf32, #tpu.memory_space<vmem>>, vector<32x512xf32>,
    return
  }
  func.func @transform_0(%arg0: i32) -> (i32, i32) {
    %c0_i32 = arith.constant 0 : i32
    %c0_i32_0 = arith.constant 0 : i32
    return %arg0, %c0_i32 : i32, i32
  }
  func.func @transform_1(%arg0: i32) -> (i32, i32) {
    %c0_i32 = arith.constant 0 : i32
    %c0_i32_0 = arith.constant 0 : i32
    return %arg0, %c0_i32 : i32, i32
  }
  func.func @transform_2(%arg0: i32) -> (i32, i32) {
    %c0_i32 = arith.constant 0 : i32
    %c0_i32_0 = arith.constant 0 : i32
    return %arg0, %c0_i32 : i32, i32
  }
}

</mosaic_0001>

<bundles_post_ra>
// kernel: _lambda_.1
= control target key start
LH: loop header
LB: loop body
LE: loop exit
PB: predicated region body
PF: predicated region fallthrough
CT: control target
= control target key end

     0   :  { %s344_s9 = smov 0   ;;  %s406_s0 = inlined_call_operand.vmem [shape: f32[64,512], index: 0, kind: input, shape index: {}]   ;;  %s407_s1 = inlined_call_operand.vmem [shape: f32[512,128], index: 1, kind: input, shape index: {}]   ;;  %s408_s2 = inlined_call_operand.vmem [shape: f32[64,512], index: 2, kind: output, shape index: {}]  }
   0x1 LB: > { %s296_s10 = sadd.s32 4294967295, %s327_s9   ;;  %p300_p0 = scmp.ge.s32.totalorder %s327_s9, 1  ;;  %s327_s9 = sphi %s344_s9, %s12_s9  }
   0x2   : > { %p125_p1 = scmp.lt.s32.totalorder %s327_s9, 3 }
   0x4   : > { %p126_p2 = pnand %p300_p0, %p125_p1 }
   0x5   : > { %s301_s11 = sshll.u32 (!%p126_p2), %s296_s10, 2 }
   0x6   : > { %129 = sbr.rel (%p126_p2) target bundleno = 29 (0x1d), region = 28  ;;  %p155_p3 = scmp.lt.s32.totalorder (!%p126_p2), %s301_s11, 7 }
   0x7   : > { %p162_p4 = scmp.lt.s32.totalorder (!%p126_p2), %s301_s11, 63 }
   0xd   : > { %s156_s12 = scalar_select %p155_p3, %s301_s11, 7 }
   0xe   : > { %s410_s11 = smov (!%p162_p4, %s301_s11), 63 }
   0xf   : > { %s311_s13 = sshll.u32 %s156_s12, 5  ;;  %s305_s17 = sshll.u32 %s410_s11, 3 }
  0x10   : > { %s355_s16 = scalar_lea.vmem %s406_s0, %s311_s13  ;;  %s360_s20 = scalar_lea.vmem %s407_s1, %s305_s17 }
  0x11   : > { %v178_v0 = vld [vmem:[%s355_s16] sm:$0xff]  ;;  %v179_v1 = vld [vmem:[%s355_s16 + $0x8] sm:$0xff]  ;;  %v180_v2 = vld [vmem:[%s355_s16 + $0x10] sm:$0xff]  ;;  %s368_s23 = scalar_lea.vmem %s408_s2, %s311_s13 }
  0x12   : > { %v174_v3 = vld [vmem:[%s360_s20] sm:$0xff]  ;;  %v181_v4 = vld [vmem:[%s355_s16 + $0x18] sm:$0xff]  ;;  %v175_v5 = vld [vmem:[%s360_s20 + $0x8] sm:$0xff] }
  0x13   : > { %v194_v6 = vadd.f32 %v178_v0, %v174_v3  ;;  %v195_v7 = vadd.f32 %v179_v1, %v174_v3  ;;  %v196_v8 = vadd.f32 %v180_v2, %v174_v3  ;;  %v197_v9 = vadd.f32 %v181_v4, %v174_v3  ;;  %v182_v10 = vld [vmem:[%s355_s16 + $0x20] sm:$0xff]  ;;  %v183_v11 = vld [vmem:[%s355_s16 + $0x28] sm:$0xff]  ;;  %v184_v12 = vld [vmem:[%s355_s16 + $0x30] sm:$0xff] }
  0x14   : > { %v198_v13 = vadd.f32 %v182_v10, %v175_v5  ;;  %v199_v14 = vadd.f32 %v183_v11, %v175_v5  ;;  %v200_v15 = vadd.f32 %v184_v12, %v175_v5  ;;  %v185_v16 = vld [vmem:[%s355_s16 + $0x38] sm:$0xff]  ;;  %v176_v17 = vld [vmem:[%s360_s20 + $0x10] sm:$0xff]  ;;  %v186_v18 = vld [vmem:[%s355_s16 + $0x40] sm:$0xff] }
  0x15   : > { %210 = vst [vmem:[%s368_s23] sm:$0xff] %v194_v6  ;;  %211 = vst [vmem:[%s368_s23 + $0x8] sm:$0xff] %v195_v7  ;;  %v201_v19 = vadd.f32 %v185_v16, %v175_v5  ;;  %v202_v20 = vadd.f32 %v186_v18, %v176_v17  ;;  %v187_v21 = vld [vmem:[%s355_s16 + $0x48] sm:$0xff]  ;;  %v188_v22 = vld [vmem:[%s355_s16 + $0x50] sm:$0xff] }
  0x16   : > { %212 = vst [vmem:[%s368_s23 + $0x10] sm:$0xff] %v196_v8  ;;  %213 = vst [vmem:[%s368_s23 + $0x18] sm:$0xff] %v197_v9  ;;  %v189_v23 = vld [vmem:[%s355_s16 + $0x58] sm:$0xff]  ;;  %v203_v24 = vadd.f32 %v187_v21, %v176_v17  ;;  %v204_v25 = vadd.f32 %v188_v22, %v176_v17  ;;  %v190_v28 = vld [vmem:[%s355_s16 + $0x60] sm:$0xff] }
  0x17   : > { %214 = vst [vmem:[%s368_s23 + $0x20] sm:$0xff] %v198_v13  ;;  %215 = vst [vmem:[%s368_s23 + $0x28] sm:$0xff] %v199_v14  ;;  %v205_v26 = vadd.f32 %v189_v23, %v176_v17  ;;  %v177_v27 = vld [vmem:[%s360_s20 + $0x18] sm:$0xff]  ;;  %v191_v29 = vld [vmem:[%s355_s16 + $0x68] sm:$0xff] }
  0x18   : > { %216 = vst [vmem:[%s368_s23 + $0x30] sm:$0xff] %v200_v15  ;;  %217 = vst [vmem:[%s368_s23 + $0x38] sm:$0xff] %v201_v19  ;;  %v206_v30 = vadd.f32 %v190_v28, %v177_v27  ;;  %v207_v31 = vadd.f32 %v191_v29, %v177_v27  ;;  %v192_v32 = vld [vmem:[%s355_s16 + $0x70] sm:$0xff]  ;;  %v193_v33 = vld [vmem:[%s355_s16 + $0x78] sm:$0xff] }
  0x19   : > { %218 = vst [vmem:[%s368_s23 + $0x40] sm:$0xff] %v202_v20  ;;  %219 = vst [vmem:[%s368_s23 + $0x48] sm:$0xff] %v203_v24  ;;  %v208_v34 = vadd.f32 %v192_v32, %v177_v27  ;;  %v209_v35 = vadd.f32 %v193_v33, %v177_v27 }
  0x1a   : > { %220 = vst [vmem:[%s368_s23 + $0x50] sm:$0xff] %v204_v25  ;;  %221 = vst [vmem:[%s368_s23 + $0x58] sm:$0xff] %v205_v26 }
  0x1b   : > { %222 = vst [vmem:[%s368_s23 + $0x60] sm:$0xff] %v206_v30  ;;  %223 = vst [vmem:[%s368_s23 + $0x68] sm:$0xff] %v207_v31 }
  0x1c   : > { %224 = vst [vmem:[%s368_s23 + $0x70] sm:$0xff] %v208_v34  ;;  %225 = vst [vmem:[%s368_s23 + $0x78] sm:$0xff] %v209_v35 }
  0x1d PF: > { %s12_s9 = sadd.s32 1, %s327_s9  }
  0x1e   : > { %p9_p5 = scmp.ge.s32.totalorder %s12_s9, 4  }
  0x20   :  { %11 = sbr.rel (!%p9_p5) target bundleno = 1 (0x1), region = 61 }

</bundles_post_ra>
